<compile_context>
chip_gen: v5e
topology: v5e:2x2
jax: 0.10.0
libtpu: 0.0.40
codegen_flags: <defaults>
</compile_context>

<pallas_src>
import functools

import jax
import jax.numpy as jnp
from jax import lax
from jax.experimental import pallas as pl
from jax.experimental.pallas import tpu as pltpu

LANES = 128
# Per-input block byte budget: 2 MiB -> 8 MiB total VMEM with double buffering.
MAX_BLOCK_BYTES = 2 * 1024 * 1024
NUM_SPLITS = 2  # v7x has 2 TensorCores; harmless on single-core v5e/v6e.


def _mse_kernel(x_ref, t_ref, out_ref, acc_ref, *,
                block_rows, blocks_per_split, total_rows,
                needs_mask, single_step):
    """Accumulate sum((t - x)^2) into an (8, cols) VMEM accumulator."""
    d = t_ref[...].astype(jnp.float32) - x_ref[...].astype(jnp.float32)

    if single_step:
        # Whole array in one block: reduce directly, no running accumulator.
        out_ref[...] = jnp.sum(d * d).reshape(1, 1, 1)
        return

    c = pl.program_id(0)
    j = pl.program_id(1)
    row0 = (c * blocks_per_split + j) * block_rows

    @pl.when(j == 0)
    def _init():
        acc_ref[...] = jnp.zeros_like(acc_ref)

    def _accumulate():
        dd = d
        if needs_mask:
            row_idx = row0 + lax.broadcasted_iota(jnp.int32, dd.shape, 0)
            # Mask before squaring so OOB garbage never contributes.
            dd = jnp.where(row_idx < total_rows, dd, 0.0)
        sq = dd * dd
        # Fold groups of 8 rows with whole-vreg VALU adds into the (8, cols)
        # accumulator; the single cross-lane reduce happens only in finalize.
        sq = jnp.sum(sq.reshape(block_rows // 8, 8, sq.shape[-1]), axis=0)
        acc_ref[...] += sq

    if needs_mask:
        # Skip fully out-of-range (clamped duplicate) grid steps entirely.
        pl.when(row0 < total_rows)(_accumulate)
    else:
        _accumulate()

    @pl.when(j == pl.num_programs(1) - 1)
    def _finalize():
        out_ref[...] = jnp.sum(acc_ref[...]).reshape(1, 1, 1)


def mse_loss(inp, target, *, max_block_bytes=MAX_BLOCK_BYTES):
    """MSE.forward((input, target)) == mean((target - input)**2)."""
    assert inp.shape == target.shape
    n_elems = inp.size
    assert n_elems > 0

    itemsize = min(jnp.dtype(inp.dtype).itemsize, jnp.dtype(target.dtype).itemsize)
    sub = max(8, 32 // itemsize)  # dtype-dependent sublane packing multiple

    # Prefer a (rows, cols) view that keeps the natural lane-friendly last dim
    # (collapsing leading dims only), avoiding a relayout of both tensors.
    last = inp.shape[-1] if inp.ndim >= 1 else 1
    if (inp.ndim >= 2 and last % LANES == 0
            and last * itemsize * sub <= max(max_block_bytes, last * itemsize * sub)):
        cols = int(last)
        rows = n_elems // cols
        x2 = inp.reshape(rows, cols)
        t2 = target.reshape(rows, cols)
    else:
        # Fallback: flatten to (rows, 128); pad < 128 zeros only if needed.
        cols = LANES
        rows = pl.cdiv(n_elems, LANES)
        padded = rows * LANES
        x = jnp.ravel(inp)
        t = jnp.ravel(target)
        if padded != n_elems:
            x = jnp.pad(x, (0, padded - n_elems))
            t = jnp.pad(t, (0, padded - n_elems))
        x2 = x.reshape(rows, cols)
        t2 = t.reshape(rows, cols)

    # Rows per block: as many as the byte budget allows, rounded to the dtype
    # packing multiple; a single block spanning the whole array keeps its
    # exact (possibly unaligned) row count, which is always a legal block.
    cap_rows = max(sub, (max_block_bytes // (cols * itemsize)) // sub * sub)
    if rows <= cap_rows:
        block_rows = rows
        num_blocks = 1
    else:
        block_rows = cap_rows
        num_blocks = pl.cdiv(rows, block_rows)

    n_split = min(NUM_SPLITS, num_blocks)
    blocks_per_split = pl.cdiv(num_blocks, n_split)
    covered = n_split * blocks_per_split * block_rows
    needs_mask = covered != rows
    single_step = (n_split == 1 and blocks_per_split == 1)
    last_block = num_blocks - 1

    def in_index_map(c, j):
        # Clamp so a DMA never starts past the array end; the duplicated block
        # is skipped/masked inside the kernel.
        return (jnp.minimum(c * blocks_per_split + j, last_block), 0)

    in_spec = pl.BlockSpec((block_rows, cols), in_index_map)

    kernel = functools.partial(
        _mse_kernel,
        block_rows=block_rows,
        blocks_per_split=blocks_per_split,
        total_rows=rows,
        needs_mask=needs_mask,
        single_step=single_step,
    )

    partials = pl.pallas_call(
        kernel,
        out_shape=jax.ShapeDtypeStruct((n_split, 1, 1), jnp.float32),
        grid_spec=pltpu.PrefetchScalarGridSpec(
            num_scalar_prefetch=0,
            grid=(n_split, blocks_per_split),
            in_specs=[in_spec, in_spec],
            out_specs=pl.BlockSpec((1, 1, 1), lambda c, j: (c, 0, 0)),
            scratch_shapes=[pltpu.VMEM((8, cols), jnp.float32)],
        ),
        compiler_params=pltpu.CompilerParams(
            dimension_semantics=("parallel", "arbitrary"),
        ),
        cost_estimate=pl.CostEstimate(
            flops=3 * n_elems,
            transcendentals=0,
            bytes_accessed=(x2.size * x2.dtype.itemsize
                            + t2.size * t2.dtype.itemsize
                            + 4 * n_split),
        ),
    )(x2, t2)

    # Sum per-core partials, divide by the true element count (mean).
    return jnp.sum(partials) * jnp.float32(1.0 / n_elems)

# TODO(synk): MSE.backward (gradient -2/N * (target - input)) is not implemented
# here; only the forward pass is translated.


if __name__ == "__main__":
    key = jax.random.PRNGKey(0)
    k1, k2 = jax.random.split(key)

    # 1) NCHW case implied by the module's forward: batch=2, channels=4, 16x16.
    x = jax.random.normal(k1, (2, 4, 16, 16), dtype=jnp.float32)
    y = jax.random.normal(k2, (2, 4, 16, 16), dtype=jnp.float32)
    loss = mse_loss(x, y)
    jax.block_until_ready(loss)
    ref = jnp.mean((y - x) ** 2)
    assert jnp.allclose(loss, ref, rtol=1e-5, atol=1e-6), (loss, ref)

    # 2) Multi-block / two-way-split / ragged-mask / clamped-duplicate path
    #    (same code path large tensors hit with 2 MiB blocks).
    xb = jax.random.normal(k1, (2, 5, 16, 16), dtype=jnp.float32)
    yb = jax.random.normal(k2, (2, 5, 16, 16), dtype=jnp.float32)
    loss_b = mse_loss(xb, yb, max_block_bytes=8 * 128 * 4)
    jax.block_until_ready(loss_b)
    ref_b = jnp.mean((yb - xb) ** 2)
    assert jnp.allclose(loss_b, ref_b, rtol=1e-5, atol=1e-6), (loss_b, ref_b)

    # 3) Lane-friendly last-dim fast path (no ravel relayout), multi-block.
    xc = jax.random.normal(k1, (8, 8, 256), dtype=jnp.float32)
    yc = jax.random.normal(k2, (8, 8, 256), dtype=jnp.float32)
    loss_c = mse_loss(xc, yc, max_block_bytes=8 * 256 * 4)
    jax.block_until_ready(loss_c)
    ref_c = jnp.mean((yc - xc) ** 2)
    assert jnp.allclose(loss_c, ref_c, rtol=1e-5, atol=1e-6), (loss_c, ref_c)
    loss_c2 = mse_loss(xc, yc)  # default budget -> single full-extent block
    jax.block_until_ready(loss_c2)
    assert jnp.allclose(loss_c2, ref_c, rtol=1e-5, atol=1e-6), (loss_c2, ref_c)

    # 4) bf16 inputs (16-row packing multiple).
    xd = jax.random.normal(k1, (4, 4, 128), dtype=jnp.bfloat16)
    yd = jax.random.normal(k2, (4, 4, 128), dtype=jnp.bfloat16)
    loss_d = mse_loss(xd, yd)
    jax.block_until_ready(loss_d)
    ref_d = jnp.mean((yd.astype(jnp.float32) - xd.astype(jnp.float32)) ** 2)
    assert jnp.allclose(loss_d, ref_d, rtol=1e-4, atol=1e-5), (loss_d, ref_d)

    print("KERNEL_OK")
</pallas_src>

<mosaic_0001>
module attributes {stable_mosaic.version = 11 : i64} {
  func.func @_mse_kernel(%arg0: i32, %arg1: i32, %arg2: memref<16x128xf32, #tpu.memory_space<vmem>>, %arg3: memref<16x128xf32, #tpu.memory_space<vmem>>, %arg4: memref<1x1x1xf32, #tpu.memory_space<vmem>>, %arg5: memref<8x128xf32, #tpu.memory_space<vmem>>) attributes {dimension_semantics = [#tpu.dimension_semantics<parallel>, #tpu.dimension_semantics<arbitrary>], iteration_bounds = array<i64: 1, 1>, scalar_prefetch = 0 : i64, scratch_operands = 1 : i64, tpu.core_type = #tpu.core_type<tc>, window_params = [{transform_indices = @transform_0, window_bounds = array<i64: 16, 128>}, {transform_indices = @transform_1, window_bounds = array<i64: 16, 128>}, {transform_indices = @transform_2, window_bounds = array<i64: 1, 1, 1>}]} {
    %c0 = arith.constant 0 : index
    %c0_0 = arith.constant 0 : index
    %0 = vector.load %arg3[%c0, %c0_0] : memref<16x128xf32, #tpu.memory_space<vmem>>, vector<16x128xf32>
    %c0_1 = arith.constant 0 : index
    %c0_2 = arith.constant 0 : index
    %1 = vector.load %arg2[%c0_1, %c0_2] : memref<16x128xf32, #tpu.memory_space<vmem>>, vector<16x128xf32>
    %2 = arith.subf %0, %1 : vector<16x128xf32>
    %3 = arith.mulf %2, %2 : vector<16x128xf32>
    %4 = vector.shape_cast %3 : vector<16x128xf32> to vector<1x16x128xf32>
    %cst = arith.constant dense<0.000000e+00> : vector<1xf32>
    %5 = vector.multi_reduction <add>, %4, %cst [1, 2] : vector<1x16x128xf32> to vector<1xf32>
    %6 = vector.shape_cast %5 : vector<1xf32> to vector<1x1x1xf32>
    %7 = vector.extract %6[0, 0, 0] : f32 from vector<1x1x1xf32>
    %8 = vector.broadcast %7 : f32 to vector<1x1x1xf32>
    %c0_3 = arith.constant 0 : index
    %c0_4 = arith.constant 0 : index
    %c0_5 = arith.constant 0 : index
    %9 = vector.load %arg4[%c0_3, %c0_4, %c0_5] : memref<1x1x1xf32, #tpu.memory_space<vmem>>, vector<1x1x1xf32>
    tpu.vector_store %arg4[%c0_3, %c0_4, %c0_5], %8 {strides = array<i32>} : memref<1x1x1xf32, #tpu.memory_space<vmem>>, vector<1x1x1xf32>,
    return
  }
  func.func @transform_0(%arg0: i32, %arg1: i32) -> (i32, i32) {
    %c1_i32 = arith.constant 1 : i32
    %0 = arith.muli %arg0, %c1_i32 : i32
    %1 = arith.addi %0, %arg1 : i32
    %c0_i32 = arith.constant 0 : i32
    %2 = arith.minsi %1, %c0_i32 : i32
    %c0_i32_0 = arith.constant 0 : i32
    %c0_i32_1 = arith.constant 0 : i32
    return %2, %c0_i32_0 : i32, i32
  }
  func.func @transform_1(%arg0: i32, %arg1: i32) -> (i32, i32) {
    %c1_i32 = arith.constant 1 : i32
    %0 = arith.muli %arg0, %c1_i32 : i32
    %1 = arith.addi %0, %arg1 : i32
    %c0_i32 = arith.constant 0 : i32
    %2 = arith.minsi %1, %c0_i32 : i32
    %c0_i32_0 = arith.constant 0 : i32
    %c0_i32_1 = arith.constant 0 : i32
    return %2, %c0_i32_0 : i32, i32
  }
  func.func @transform_2(%arg0: i32, %arg1: i32) -> (i32, i32, i32) {
    %c0_i32 = arith.constant 0 : i32
    %c0_i32_0 = arith.constant 0 : i32
    %c0_i32_1 = arith.constant 0 : i32
    return %arg0, %c0_i32, %c0_i32_0 : i32, i32, i32
  }
}

</mosaic_0001>

<bundles_post_ra>
// kernel: tpu_custom_call.1
= control target key start
LH: loop header
LB: loop body
LE: loop exit
PB: predicated region body
PF: predicated region fallthrough
CT: control target
= control target key end

     0   :  { %7 = vsyncpa [#allocation4], 0  ;;  %s221_s0 = inlined_call_operand.hbm [shape: f32[16,128], index: 0, kind: input, shape index: {}]   ;;  %s222_s1 = inlined_call_operand.hbm [shape: f32[16,128], index: 1, kind: input, shape index: {}]   ;;  %s223_s2 = inlined_call_operand.hbm [shape: f32[1,1,1], index: 2, kind: output, shape index: {}]  }
   0x1   :  { %8 = vsyncpa [#allocation7], 0 }
   0x2   :  { %9 = vsyncpa [#allocation5], 0  ;;  %s20_s11 = sshll.u32 %s221_s0, 4  ;;  %s192_s12 = smov [#allocation3]   ;;  %s21_s11 = int_to_ptr.hbm [resolvable:$true] %s20_s11 }
   0x3   :  { %s22_s13 = sshll.u32 %s192_s12, 4  ;;  %s39_s16 = sshll.u32 %s222_s1, 4  ;;  %s23_s13 = int_to_ptr.vmem [resolvable:$true] %s22_s13  ;;  %s40_s16 = int_to_ptr.hbm [resolvable:$true] %s39_s16 }
   0x4   :  { %s193_s17 = smov 128   ;;  %s194_s18 = smov 8  }
   0x5   :  { %28 = dma.hbm_to_vmem [thread:$0]  %s21_s11, 256, %s23_s13, [#allocation4], %s193_s17, %s193_s17, %s194_s18  }
   0x6   :  { %s195_s19 = smov [#allocation6]  }
   0x7   :  { %s41_s20 = sshll.u32 %s195_s19, 4  ;;  %s42_s20 = int_to_ptr.vmem [resolvable:$true] %s41_s20 }
   0x8   :  { %47 = dma.hbm_to_vmem [thread:$0]  %s40_s16, 256, %s42_s20, [#allocation7], %s193_s17, %s193_s17, %s194_s18  }
   0x9   :  { %186 = dma.done.wait [#allocation4], 256  }
   0xa   :  { %187 = vsyncadd [#allocation4], 4294967040 }
   0xb   :  { %188 = dma.done.wait [#allocation7], 256  }
   0xc   :  { %189 = vsyncadd [#allocation7], 4294967040  ;;  %v64_v0 = vld [vmem:[#allocation6] sm:$0xff]  ;;  %v65_v1 = vld [vmem:[#allocation6 + $0x8] sm:$0xff]  ;;  %s196_s0 = smov [#allocation8]   ;;  %s92_s23 = sshll.u32 %s223_s2, 4  ;;  %s93_s23 = int_to_ptr.hbm [resolvable:$true] %s92_s23 }
   0xd   :  { %v66_v2 = vld [vmem:[#allocation3] sm:$0xff]  ;;  %v67_v3 = vld [vmem:[#allocation3 + $0x8] sm:$0xff]  ;;  %s90_s1 = sshll.u32 %s196_s0, 4  ;;  %vm83_vm0 = vcmask 0   ;;  %s91_s1 = int_to_ptr.vmem [resolvable:$true] %s90_s1 }
   0xe   :  { %v68_v4 = vsub.f32 %v64_v0, %v66_v2  ;;  %v69_v5 = vsub.f32 %v65_v1, %v67_v3 }
  0x10   :  { %v70_v6 = vmul.f32 %v68_v4, %v68_v4  ;;  %v71_v7 = vmul.f32 %v69_v5, %v69_v5 }
  0x12   :  { %v72_v8 = vadd.f32 %v71_v7, %v70_v6 }
  0x14   :  { %73 = vadd.xlane.f32.xlu0 %v72_v8 }
  0x87   :  { %v74_v9 = vpop.xlane.xlu0 %73 }
  0x88   :  { %v75_v10 = vrot.slane %v74_v9, 4 }
  0x8a   :  { %v76_v11 = vadd.f32 %v75_v10, %v74_v9 }
  0x8c   :  { %v77_v12 = vrot.slane %v76_v11, 2 }
  0x8e   :  { %v78_v13 = vadd.f32 %v77_v12, %v76_v11 }
  0x90   :  { %v79_v14 = vrot.slane %v78_v13, 1 }
  0x92   :  { %v80_v15 = vadd.f32 %v79_v14, %v78_v13 }
  0x94   :  { %107 = vpush %v80_v15 }
  0xc5   :  { %s108_s24 = spop %107 }
  0xc6   :  { %v82_v16 = vstv %s108_s24 }
  0xc7   :  { %84 = vst.msk [vmem:[#allocation8] sm:$0x1] %vm83_vm0, %v82_v16 }
  0xc8   :  { %95 = dma.vmem_to_hbm [thread:$0]  %s91_s1, 16, %s93_s23, [#allocation5]  }
  0xc9   :  { %190 = dma.done.wait [#allocation5], 16  }
  0xca   :  { %191 = vsyncadd [#allocation5], 4294967280 }
  0xcb   :  { %100 = vsyncpa [#allocation4], 1 }
  0xcc   :  { %101 = vsyncpa [#allocation7], 1 }
  0xcd   :  { %102 = vsyncpa [#allocation5], 1 }

</bundles_post_ra>
